<compile_context>
chip_gen: v6e
topology: v6e:2x2x1
jax: 0.10.0
libtpu: 0.0.40
codegen_flags: <defaults>
</compile_context>

<pallas_src>
import functools

import jax
import jax.numpy as jnp
from jax.experimental import pallas as pl
from jax.experimental.pallas import tpu as pltpu


# ----------------------------------------------------------------------------
# helpers
# ----------------------------------------------------------------------------
def _round_up(n, m):
    return ((n + m - 1) // m) * m


def _pad_to(x, shape):
    return jnp.pad(x, [(0, t - s) for s, t in zip(x.shape, shape)])


# ----------------------------------------------------------------------------
# kernel 1: tiled per-row spatial mean (the HBM-bound reduction)
# ----------------------------------------------------------------------------
def _spatial_mean_kernel(x_ref, out_ref, acc_ref, *, s_total, s_tile):
    k = pl.program_id(1)
    n_k = pl.num_programs(1)
    n_cols = s_tile // 128
    ragged = (s_total % s_tile) != 0

    @pl.when(k == 0)
    def _init():
        acc_ref[...] = jnp.zeros_like(acc_ref)

    def accumulate(masked):
        # Column-sliced loads with per-column upcast: no (r_tile, s_tile) f32
        # temp in VMEM, the hot loop is pure vld + vadd (VPU lane-parallel).
        partial = None
        for c in range(n_cols):
            col = x_ref[:, c * 128:(c + 1) * 128].astype(jnp.float32)
            if masked:
                # (1,128) lane iota only; broadcast into the (r_tile,128) select.
                lane = (jax.lax.broadcasted_iota(jnp.int32, (1, 128), 1)
                        + k * s_tile + c * 128)
                col = jnp.where(lane < s_total, col, 0.0)
            partial = col if partial is None else partial + col
        acc_ref[...] += partial

    if ragged:
        # Only the last S tile can contain out-of-range lanes (the padded DMA
        # region holds undefined data) -- pay the mask only there.
        @pl.when(k == n_k - 1)
        def _last():
            accumulate(True)

        @pl.when(k != n_k - 1)
        def _not_last():
            accumulate(False)
    else:
        accumulate(False)

    @pl.when(k == n_k - 1)
    def _finalize():
        # Single cross-lane (XLU) reduce + scale, once per row block.
        total = jnp.sum(acc_ref[...], axis=-1, keepdims=True)   # (r_tile, 1)
        out_ref[...] = total * (1.0 / s_total)


def spatial_mean(x2d, *, s_tile=None, r_tile=256):
    """Per-row mean of a (rows, S) array, streamed in native dtype (f32 out)."""
    rows, s_total = x2d.shape
    itemsize = jnp.dtype(x2d.dtype).itemsize
    sub = 32 // itemsize                       # 8 f32 / 16 bf16 sublane quantum

    # Cap r_tile (vreg pressure: partial + acc RMW live ranges) and clamp so
    # the 'parallel' row axis yields >=2 blocks when rows allow it -> both v7x
    # TensorCores share the HBM-bound work.
    r_cap = max(_round_up(pl.cdiv(rows, 2), sub), sub)
    r_tile = _round_up(min(r_tile, r_cap), sub)

    if s_tile is None:
        # ~2 MiB input blocks (4 MiB double-buffered) amortize the ~0.35 us
        # per-grid-step overhead while staying inside every generation's
        # scoped-VMEM default.
        s_tile = max((2 << 20) // (r_tile * itemsize), 128)
    s_tile = _round_up(min(s_tile, _round_up(s_total, 128)), 128)

    grid = (pl.cdiv(rows, r_tile), pl.cdiv(s_total, s_tile))
    # NOTE: padded rows (rows_pad > rows) read undefined data; safe because the
    # reduction is strictly row-wise and those rows are sliced off below.
    rows_pad = grid[0] * r_tile

    block_bytes = r_tile * s_tile * itemsize
    vmem_limit = max(2 * block_bytes + r_tile * 128 * 4 + (2 << 20), 16 << 20)

    out = pl.pallas_call(
        functools.partial(_spatial_mean_kernel, s_total=s_total, s_tile=s_tile),
        out_shape=jax.ShapeDtypeStruct((rows_pad, 1), jnp.float32),
        grid_spec=pltpu.PrefetchScalarGridSpec(
            num_scalar_prefetch=0,
            grid=grid,
            in_specs=[pl.BlockSpec((r_tile, s_tile), lambda r, k: (r, k))],
            out_specs=pl.BlockSpec((r_tile, 1), lambda r, k: (r, 0)),
            scratch_shapes=[pltpu.VMEM((r_tile, 128), jnp.float32)],
        ),
        compiler_params=pltpu.CompilerParams(
            dimension_semantics=("parallel", "arbitrary"),
            vmem_limit_bytes=vmem_limit),
    )(x2d)
    return out[:rows, 0]


# ----------------------------------------------------------------------------
# kernel 2: tiny FC + sigmoid epilogue (single fused gate matmul, one store)
# ----------------------------------------------------------------------------
def _mmtm_excite_kernel(vm_ref, sm_ref,
                        w_sq_v_ref, w_sq_s_ref, b_sq_ref,
                        w_out_ref, b_out_ref, out_ref):
    # fc_squeeze on concat([vm, sm], 1):  concat @ W == vm @ W[:Cv] + sm @ W[Cv:]
    exc = (jnp.dot(vm_ref[...], w_sq_v_ref[...], preferred_element_type=jnp.float32)
           + jnp.dot(sm_ref[...], w_sq_s_ref[...], preferred_element_type=jnp.float32)
           + b_sq_ref[...])
    exc = jnp.maximum(exc, 0.0)                                   # ReLU

    # fc_visual and fc_skeleton fused into one MXU pass (weights pre-concat'd).
    gate = (jnp.dot(exc, w_out_ref[...], preferred_element_type=jnp.float32)
            + b_out_ref[...])
    out_ref[...] = jax.nn.sigmoid(gate)         # one lane-dense unmasked store


# ----------------------------------------------------------------------------
# forward
# ----------------------------------------------------------------------------
def mmtm_forward(visual, skeleton, params, *, s_tile=None, r_tile=256):
    """visual: (B, Cv, H, W), skeleton: (B, Cs, H', W') — NCHW like PyTorch."""
    B, Cv = visual.shape[:2]
    Cs = skeleton.shape[1]

    # free metadata reshapes; NO host dtype cast (stream native dtype)
    vis2d = visual.reshape(B * Cv, -1)
    sk2d = skeleton.reshape(B * Cs, -1)

    same_s = (vis2d.shape[1] == sk2d.shape[1]) and (vis2d.dtype == sk2d.dtype)
    total_bytes = (vis2d.size + sk2d.size) * jnp.dtype(vis2d.dtype).itemsize
    if same_s and total_bytes <= (8 << 20):
        # Launch-overhead regime: one longer grid amortizes pipeline ramp-up;
        # the concat copy is negligible at these sizes.
        stacked = jnp.concatenate([vis2d, sk2d], axis=0)
        means = spatial_mean(stacked, s_tile=s_tile, r_tile=r_tile)
        vis_mean = means[:B * Cv].reshape(B, Cv)
        sk_mean = means[B * Cv:].reshape(B, Cs)
    else:
        vis_mean = spatial_mean(vis2d, s_tile=s_tile, r_tile=r_tile).reshape(B, Cv)
        sk_mean = spatial_mean(sk2d, s_tile=s_tile, r_tile=r_tile).reshape(B, Cs)

    # --- host-side weight prep: zero-pad output lanes to multiples of 128 ---
    w_sq, b_sq = params["fc_squeeze"]                 # (Cv+Cs, dim_out), (dim_out,)
    w_v, b_v = params["fc_visual"]                    # (dim_out, Cv), (Cv,)
    w_s, b_s = params["fc_skeleton"]                  # (dim_out, Cs), (Cs,)
    dim_out = w_sq.shape[1]
    Dp = _round_up(dim_out, 128)
    Cvp = _round_up(Cv, 128)
    Csp = _round_up(Cs, 128)

    w_sq_v = _pad_to(w_sq[:Cv], (Cv, Dp))
    w_sq_s = _pad_to(w_sq[Cv:], (Cs, Dp))
    b_sq_p = _pad_to(b_sq[None, :], (1, Dp))
    # single fused output projection: [fc_visual | fc_skeleton] along lanes
    w_out = jnp.concatenate(
        [_pad_to(w_v, (Dp, Cvp)), _pad_to(w_s, (Dp, Csp))], axis=1)
    b_out = jnp.concatenate(
        [_pad_to(b_v[None, :], (1, Cvp)), _pad_to(b_s[None, :], (1, Csp))], axis=1)

    vmem = pl.BlockSpec(memory_space=pltpu.MemorySpace.VMEM)
    gated = pl.pallas_call(
        _mmtm_excite_kernel,
        out_shape=jax.ShapeDtypeStruct((B, Cvp + Csp), jnp.float32),
        in_specs=[vmem] * 7,
        out_specs=vmem,
    )(vis_mean, sk_mean, w_sq_v, w_sq_s, b_sq_p, w_out, b_out)

    vis_out = gated[:, :Cv]
    sk_out = gated[:, Cvp:Cvp + Cs]

    # PyTorch: pad trailing singleton dims back up to the input rank
    vis_out = vis_out.reshape(vis_out.shape + (1,) * (visual.ndim - 2))
    sk_out = sk_out.reshape(sk_out.shape + (1,) * (skeleton.ndim - 2))
    return vis_out, sk_out


# ----------------------------------------------------------------------------
# params + pure-JAX reference
# ----------------------------------------------------------------------------
def init_mmtm_params(key, dim_visual, dim_skeleton, ratio):
    dim = dim_visual + dim_skeleton
    dim_out = int(2 * dim / ratio)
    ks = jax.random.split(key, 6)

    def linear(kw, kb, fan_in, fan_out):
        bound = 1.0 / jnp.sqrt(fan_in)
        w = jax.random.uniform(kw, (fan_in, fan_out), jnp.float32, -bound, bound)
        b = jax.random.uniform(kb, (fan_out,), jnp.float32, -bound, bound)
        return w, b

    return {
        "fc_squeeze": linear(ks[0], ks[1], dim, dim_out),
        "fc_visual": linear(ks[2], ks[3], dim_out, dim_visual),
        "fc_skeleton": linear(ks[4], ks[5], dim_out, dim_skeleton),
    }


def mmtm_ref(visual, skeleton, params):
    visual = visual.astype(jnp.float32)
    skeleton = skeleton.astype(jnp.float32)
    B, Cv = visual.shape[:2]
    Cs = skeleton.shape[1]
    vm = jnp.mean(visual.reshape(B, Cv, -1), axis=-1)
    sm = jnp.mean(skeleton.reshape(B, Cs, -1), axis=-1)
    squeeze = jnp.concatenate([vm, sm], axis=1)
    w_sq, b_sq = params["fc_squeeze"]
    w_v, b_v = params["fc_visual"]
    w_s, b_s = params["fc_skeleton"]
    exc = jnp.maximum(squeeze @ w_sq + b_sq, 0.0)
    vo = jax.nn.sigmoid(exc @ w_v + b_v)
    so = jax.nn.sigmoid(exc @ w_s + b_s)
    vo = vo.reshape(vo.shape + (1,) * (visual.ndim - vo.ndim))
    so = so.reshape(so.shape + (1,) * (skeleton.ndim - so.ndim))
    return vo, so


if __name__ == "__main__":
    key = jax.random.PRNGKey(0)
    k_vis, k_sk, k_par = jax.random.split(key, 3)
    ratio = 4

    cases = [
        # ((visual shape, skeleton shape), dtype, s_tile)
        (((2, 4, 16, 16), (2, 4, 16, 16)), jnp.float32, 128),    # multi-step S reduction, stacked path
        (((2, 4, 14, 9), (2, 4, 6, 7)), jnp.float32, None),      # ragged S -> masked last tile, 2 calls
        (((2, 4, 16, 16), (2, 4, 16, 16)), jnp.bfloat16, None),  # native bf16 streaming, dtype-aware tile
        (((2, 12, 16, 16), (2, 8, 16, 16)), jnp.float32, 128),   # multiple row blocks + padded rows
    ]

    for (vshape, sshape), dtype, s_tile in cases:
        visual = jax.random.normal(k_vis, vshape, jnp.float32).astype(dtype)
        skeleton = jax.random.normal(k_sk, sshape, jnp.float32).astype(dtype)
        params = init_mmtm_params(k_par, vshape[1], sshape[1], ratio)

        vis_out, sk_out = mmtm_forward(visual, skeleton, params, s_tile=s_tile)
        jax.block_until_ready((vis_out, sk_out))

        vis_ref, sk_ref = mmtm_ref(visual, skeleton, params)
        assert vis_out.shape == vshape[:2] + (1, 1)
        assert sk_out.shape == sshape[:2] + (1, 1)
        tol = 1e-5 if dtype == jnp.float32 else 1e-3
        assert jnp.allclose(vis_out, vis_ref, atol=tol)
        assert jnp.allclose(sk_out, sk_ref, atol=tol)

    print("KERNEL_OK")
</pallas_src>

<mosaic_0001>
module attributes {stable_mosaic.version = 11 : i64} {
  func.func @_spatial_mean_kernel(%arg0: i32, %arg1: i32, %arg2: memref<8x128xf32, #tpu.memory_space<vmem>>, %arg3: memref<8x1xf32, #tpu.memory_space<vmem>>, %arg4: memref<8x128xf32, #tpu.memory_space<vmem>>) attributes {dimension_semantics = [#tpu.dimension_semantics<parallel>, #tpu.dimension_semantics<arbitrary>], iteration_bounds = array<i64: 2, 2>, scalar_prefetch = 0 : i64, scratch_operands = 1 : i64, tpu.core_type = #tpu.core_type<tc>, window_params = [{transform_indices = @transform_0, window_bounds = array<i64: 8, 128>}, {transform_indices = @transform_1, window_bounds = array<i64: 8, 1>}]} {
    %c0_i32 = arith.constant 0 : i32
    %0 = arith.cmpi eq, %arg1, %c0_i32 : i32
    %1 = arith.extui %0 : i1 to i32
    %c0_i32_0 = arith.constant 0 : i32
    %2 = arith.cmpi ne, %1, %c0_i32_0 : i32
    scf.if %2 {
      %cst = arith.constant 0.000000e+00 : f32
      %10 = vector.broadcast %cst : f32 to vector<8x128xf32>
      %c0_7 = arith.constant 0 : index
      %c0_8 = arith.constant 0 : index
      %11 = vector.load %arg4[%c0_7, %c0_8] : memref<8x128xf32, #tpu.memory_space<vmem>>, vector<8x128xf32>
      tpu.vector_store %arg4[%c0_7, %c0_8], %10 {strides = array<i32>} : memref<8x128xf32, #tpu.memory_space<vmem>>, vector<8x128xf32>,
    } else {
    }
    %c0 = arith.constant 0 : index
    %c0_1 = arith.constant 0 : index
    %3 = vector.load %arg2[%c0, %c0_1] : memref<8x128xf32, #tpu.memory_space<vmem>>, vector<8x128xf32>
    %c0_2 = arith.constant 0 : index
    %c0_3 = arith.constant 0 : index
    %4 = vector.load %arg4[%c0_2, %c0_3] : memref<8x128xf32, #tpu.memory_space<vmem>>, vector<8x128xf32>
    %5 = arith.addf %4, %3 : vector<8x128xf32>
    %c0_4 = arith.constant 0 : index
    %c0_5 = arith.constant 0 : index
    %6 = vector.load %arg4[%c0_4, %c0_5] : memref<8x128xf32, #tpu.memory_space<vmem>>, vector<8x128xf32>
    tpu.vector_store %arg4[%c0_4, %c0_5], %5 {strides = array<i32>} : memref<8x128xf32, #tpu.memory_space<vmem>>, vector<8x128xf32>,
    %c1_i32 = arith.constant 1 : i32
    %7 = arith.cmpi eq, %arg1, %c1_i32 : i32
    %8 = arith.extui %7 : i1 to i32
    %c0_i32_6 = arith.constant 0 : i32
    %9 = arith.cmpi ne, %8, %c0_i32_6 : i32
    scf.if %9 {
      %c0_7 = arith.constant 0 : index
      %c0_8 = arith.constant 0 : index
      %10 = vector.load %arg4[%c0_7, %c0_8] : memref<8x128xf32, #tpu.memory_space<vmem>>, vector<8x128xf32>
      %cst = arith.constant dense<0.000000e+00> : vector<8xf32>
      %11 = vector.multi_reduction <add>, %10, %cst [1] : vector<8x128xf32> to vector<8xf32>
      %12 = vector.shape_cast %11 : vector<8xf32> to vector<8x1xf32>
      %cst_9 = arith.constant 3.906250e-03 : f32
      %13 = vector.broadcast %cst_9 : f32 to vector<8x1xf32>
      %14 = arith.mulf %12, %13 : vector<8x1xf32>
      %c0_10 = arith.constant 0 : index
      %c0_11 = arith.constant 0 : index
      %15 = vector.load %arg3[%c0_10, %c0_11] : memref<8x1xf32, #tpu.memory_space<vmem>>, vector<8x1xf32>
      tpu.vector_store %arg3[%c0_10, %c0_11], %14 {strides = array<i32>} : memref<8x1xf32, #tpu.memory_space<vmem>>, vector<8x1xf32>,
    } else {
    }
    return
  }
  func.func @transform_0(%arg0: i32, %arg1: i32) -> (i32, i32) {
    %c0_i32 = arith.constant 0 : i32
    return %arg0, %arg1 : i32, i32
  }
  func.func @transform_1(%arg0: i32, %arg1: i32) -> (i32, i32) {
    %c0_i32 = arith.constant 0 : i32
    %c0_i32_0 = arith.constant 0 : i32
    return %arg0, %c0_i32 : i32, i32
  }
}

</mosaic_0001>

<bundles_post_ra>
// kernel: tpu_custom_call.1
= control target key start
LH: loop header
LB: loop body
LE: loop exit
PB: predicated region body
PF: predicated region fallthrough
CT: control target
= control target key end

     0   :  { %6 = vsyncpa [#allocation4], 0  ;;  %s566_s0 = inlined_call_operand.hbm [shape: f32[16,256], index: 0, kind: input, shape index: {}]   ;;  %s567_s1 = inlined_call_operand.vmem [shape: f32[16,1], index: 1, kind: output, shape index: {}]  }
   0x1   :  { %8 = vsyncpa [#allocation4 + $0x1], 0  ;;  %s439_s6 = smov 0   ;;  %s441_s7 = smov 0  }
   0x2   :  { %s443_s8 = smov 0   ;;  %s445_s9 = smov 0  }
   0x3   :  { %s447_s10 = smov 0   ;;  %s449_s11 = smov 0  }
   0x4   :  { %s451_s12 = smov 0   ;;  %s453_s13 = smov 0  }
   0x5 LB: > { %s245_s14 = sadd.s32 4294967295, %s425_s13   ;;  %s23_s15 = sadd.s32 1, %s417_s11  ;;  %s425_s13 = sphi %s453_s13, %s14_s13   ;;  %s421_s12 = sphi %s451_s12, %s577_s12   ;;  %s417_s11 = sphi %s449_s11, %s576_s11   ;;  %s413_s10 = sphi %s447_s10, %s575_s10   ;;  %s409_s9 = sphi %s445_s9, %s574_s9   ;;  %s405_s8 = sphi %s443_s8, %s573_s8   ;;  %s401_s7 = sphi %s441_s7, %s572_s7   ;;  %s397_s6 = sphi %s439_s6, %s571_s6  }
   0x6   : > { %p24_p0 = scmp.ge.s32.totalorder %s23_s15, 2  ;;  %s26_s16 = sadd.s32 1, %s421_s12 }
   0x7   : > { %s35_s17 = sadd.s32 1, %s405_s8  ;;  %p42_p1 = scmp.ne.s32.totalorder %s405_s8, %s401_s7 }
   0x8   : > { %s579_s15 = smov (%p24_p0, %s23_s15), 0  ;;  %s581_s16 = smov (!%p24_p0, %s26_s16), %s421_s12 }
   0x9   : > { %s31_s18 = ssub.s32 %s417_s11, %s579_s15  ;;  %p43_p2 = scmp.eq.s32.totalorder %s425_s13, 0 }
   0xa   : > { %p28_p3 = scmp.ge.s32.totalorder %s581_s16, 2  ;;  %p48_p4 = scmp.ne.s32.totalorder %s401_s7, %s397_s6 }
   0xb   : > { %p490_p5 = por %p43_p2, %p42_p1  ;;  %p49_p6 = scmp.eq.s32.totalorder %s245_s14, 0 }
   0xc   : > { %s583_s16 = smov (%p28_p3, %s581_s16), 0  ;;  %p265_p8 = scmp.lt.s32.totalorder %s425_s13, 4 }
   0xd   : > { %p496_p7 = por %p49_p6, %p48_p4  ;;  %s30_s21 = ssub.s32 %s421_s12, %s583_s16 }
   0xe   : > { %s32_s22 = sor.u32 %s31_s18, %s30_s21  ;;  %s98_s23 = sand.u32 1, %s405_s8  }
   0xf   : > { %p33_p9 = scmp.eq.s32.totalorder %s32_s22, 0  ;;  %s249_s24 = sshll.u32 %s98_s23, 3 }
  0x10   : > { %s250_s25 = sshll.u32 %s421_s12, 1  ;;  %s102_s29 = scalar_lea.vmem [#allocation3], %s249_s24 }
  0x11   : > { %s506_s26 = scalar_select %p33_p9, %s405_s8, %s35_s17  }
  0x12   : > { %s107_s27 = sadd.s32 %s417_s11, %s250_s25  ;;  %s111_s30 = sshll.u32 %s102_s29, 4  ;;  %s112_s30 = int_to_ptr.vmem [resolvable:$true] %s111_s30 }
  0x13   : > { %s251_s28 = sshll.u32 %s107_s27, 7  ;;  %p516_p10 = pnand %p265_p8, %p490_p5 }
  0x14   : > { %s109_s4 = scalar_lea.hbm %s566_s0, %s251_s28  ;;  %p252_p11 = scmp.ge.s32.totalorder %s425_s13, 1 }
  0x15   : > { %p116_p12 = scmp.lt.s32.totalorder %s425_s13, 5  ;;  %s99_s6 = scalar_lea.sflag [#allocation4], %s98_s23 }
  0x16   : > { %p333_p13 = pneg %p516_p10  ;;  %s344_s14 = scalar_lea.vmem %s112_s30, 128 }
  0x17   : > { %p345_p0 = scmp.ne.s32.totalorder %s112_s30, %s344_s14  ;;  %s427_s17 = smov [#allocation3]  }
  0x18   : > { %s349_s18 = sshll.u32 %s427_s17, 4  ;;  %s350_s18 = int_to_ptr.vmem [resolvable:$false] %s349_s18 }
  0x19   : > { %p347_p1 = pnand %p345_p0, %p333_p13  ;;  %s351_s21 = scalar_lea.vmem %s350_s18, 256 }
  0x1a   : > { %p352_p3 = scmp.lt.s32.totalorder %s112_s30, %s350_s18  ;;  %p353_p4 = scmp.lt.s32.totalorder %s351_s21, %s344_s14 }
  0x1b   : > { %p348_p2 = pneg %p347_p1 }
  0x1c   : > { %p354_p5 = por %p353_p4, %p352_p3 }
  0x1e   : > { %p355_p6 = pnand %p354_p5, %p348_p2 }
  0x20   : > { %358 = shalt.err (!%p355_p6)
}
  0x21   : > { %264 = dma.hbm_to_vmem [thread:$0]  (!%p516_p10), %s109_s4, 128, %s112_s30, %s99_s6  }
  0x22   : > { %p117_p8 = pnand %p252_p11, %p116_p12 }
  0x23   : > { %s122_s19 = sand.u32 (!%p117_p8), 1, %s401_s7  }
  0x24   : > { %120 = sbr.rel (%p117_p8) target bundleno = 209 (0xd1), region = 24  ;;  %s253_s22 = sshll.u32 (!%p117_p8), %s122_s19, 3 }
  0x25   : > { %s123_s23 = scalar_lea.sflag (!%p117_p8), [#allocation4], %s122_s19  ;;  %s126_s24 = scalar_lea.vmem (!%p117_p8), [#allocation3], %s253_s22 }
  0x29   : > { %392 = dma.done.wait (%p496_p7), %s123_s23, 128  }
  0x2a   : > { %394 = vsyncadd (%p496_p7), %s123_s23, 4294967168  ;;  %p144_p9 = scmp.lt.s32.totalorder %s413_s10, 1  ;;  %p255_p10 = scmp.ne.s32.totalorder %s409_s9, 0 }
  0x2c   : > { %s585_s10 = smov (!%p144_p9, %s413_s10), 1  ;;  %151 = sbr.rel (%p255_p10) target bundleno = 51 (0x33), region = 32 }
  0x2d   : > { %s254_s25 = sshll.u32 %s585_s10, 3 }
  0x2e   : > { %s147_s29 = scalar_lea.vmem %s567_s1, %s254_s25 }
  0x31   : > { %v428_v0 = vmov 0.0  }
  0x32   : > { %152 = vst [vmem:[#allocation2] sm:$0xff] %v428_v0 }
  0x33 PF: > { %v153_v1 = vld [vmem:[%s126_s24] sm:$0xff]  ;;  %p256_p7 = scmp.ne.s32.totalorder %s409_s9, 1 }
  0x38   : > { %160 = sbr.rel (%p256_p7) target bundleno = 209 (0xd1), region = 36 }
  0x39   : > { %v154_v2 = vld [vmem:[#allocation2] sm:$0xff] }
  0x3a   : > { %v155_v3 = vadd.f32 %v154_v2, %v153_v1 }
  0x3c   : > { %156 = vst [vmem:[#allocation2] sm:$0xff] %v155_v3 }
  0x3d   : > { %vm165_vm0 = vcmask 7168  }
  0x43   : > { %v161_v4 = vld [vmem:[#allocation2] sm:$0xff] }
  0x44   : > { %162 = vadd.xlane.f32.xlu0 %v161_v4 }
  0xcd   : > { %v163_v5 = vpop.xlane.xlu0 %162 }
  0xce   : > { %v164_v6 = vmul.f32 0.00390625, %v163_v5 }
  0xd0   : > { %166 = vst.msk [vmem:[%s147_s29] sm:$0xff] %vm165_vm0, %v164_v6 }
  0xd1 PF: > { %s14_s13 = sadd.s32 1, %s425_s13   ;;  %s571_s6 = smov %s401_s7 }
  0xd2   : > { %p11_p11 = scmp.ge.s32.totalorder %s14_s13, 6   ;;  %s572_s7 = smov %s405_s8 }
  0xd3   : > { %s573_s8 = smov %s506_s26  ;;  %s574_s9 = smov %s417_s11 }
  0xd4   : > { %s575_s10 = smov %s421_s12  ;;  %s576_s11 = smov %s579_s15 }
  0xd5   : > { %s577_s12 = smov %s583_s16  ;;  %13 = sbr.rel (!%p11_p11) target bundleno = 5 (0x5), region = 72 }
  0xda   :  { %186 = vsyncpa [#allocation4], 1 }
  0xdb   :  { %188 = vsyncpa [#allocation4 + $0x1], 1 }

</bundles_post_ra>
